<compile_context>
chip_gen: v5e
topology: v5e:2x2
jax: 0.10.0
libtpu: 0.0.40
codegen_flags: <defaults>
</compile_context>

<pallas_src>
import functools

import jax
import jax.numpy as jnp
from jax.experimental import pallas as pl
from jax.experimental.pallas import tpu as pltpu

EPS = 1e-09


def _round_up(x, m):
    return ((x + m - 1) // m) * m


def _choose_tiles(B, D, itemsize, budget_bytes=12 * 1024 * 1024):
    """Pick (TB, TD) so that 2 inputs x 2 pipeline buffers x TB x TD x itemsize <= budget."""
    TB = min(512, _round_up(B, 8))
    if 4 * TB * D * itemsize <= budget_bytes:
        return TB, D
    TD = max(128, (budget_bytes // (4 * TB * itemsize)) // 128 * 128)
    while 4 * TB * TD * itemsize > budget_bytes and TB > 8:
        TB = max(8, TB // 2)
    return TB, TD


def _contrastive_loss_kernel(x1_ref, x2_ref, t_ref, out_ref, sumacc_ref, *,
                             margin, p, B, D, TB, TD):
    bi = pl.program_id(0)                      # batch-tile index ("parallel")
    dj = pl.program_id(1)                      # feature-tile index ("arbitrary", innermost)

    # Widen on the VPU; inputs stay in their native (possibly bf16) dtype in HBM/VMEM.
    diff = x1_ref[...].astype(jnp.float32) - x2_ref[...].astype(jnp.float32)   # (TB, TD)

    # Mask padded feature columns of the last D tile: out-of-bounds block data is
    # unspecified (NaN in interpret mode, garbage on HW) and must not reach the sum.
    if D % TD != 0:
        col = dj * TD + jax.lax.broadcasted_iota(jnp.int32, (TB, TD), 1)
        diff = jnp.where(col < D, diff, 0.0)

    if p == 1:
        part = jnp.sum(jnp.abs(diff), axis=1, keepdims=True)                   # (TB, 1)
    else:
        part = jnp.sum(diff * diff, axis=1, keepdims=True)                     # (TB, 1)

    @pl.when(dj == 0)
    def _init():
        sumacc_ref[...] = jnp.zeros_like(sumacc_ref)

    sumacc_ref[...] += part

    @pl.when(dj == pl.num_programs(1) - 1)
    def _finalize():
        t = t_ref[...].astype(jnp.float32)                                     # (TB, 1)
        s = sumacc_ref[...]                                                    # (TB, 1)
        if p == 1:
            dist = s
            dist2 = s * s
        else:
            dist2 = s + EPS          # == distances.pow(2) in torch, exactly
            dist = jnp.sqrt(dist2)
        hinge = jnp.maximum(margin - dist, 0.0)
        losses = 0.5 * (t * dist2 + (1.0 - t) * hinge * hinge)                 # (TB, 1)
        # Mask rows that are padding of the last batch tile (their s / t may be NaN/garbage;
        # jnp.where selects 0.0 for them regardless).
        if B % TB != 0:
            row = bi * TB + jax.lax.broadcasted_iota(jnp.int32, (TB, 1), 0)
            losses = jnp.where(row < B, losses, 0.0)
        out_ref[...] = jnp.broadcast_to(jnp.sum(losses), (1, 128))


def contrastive_loss(x_1, x_2, target, *, margin=1.0, p=2, reduction="mean",
                     tb=None, td=None):
    """Pallas equivalent of ContrastiveLoss(margin, p, reduction)(x_1, x_2, target)."""
    assert x_1.shape == x_2.shape and x_1.ndim == 2
    assert p in (1, 2)
    assert reduction in ("mean", "sum")
    B, D = x_1.shape

    itemsize = jnp.dtype(x_1.dtype).itemsize
    tb_auto, td_auto = _choose_tiles(B, D, itemsize)
    TB = tb_auto if tb is None else tb
    TD = td_auto if td is None else td
    nb = (B + TB - 1) // TB
    nd = (D + TD - 1) // TD

    target_2d = target.reshape(B, 1).astype(jnp.float32)

    kernel = functools.partial(
        _contrastive_loss_kernel, margin=float(margin), p=int(p),
        B=B, D=D, TB=TB, TD=TD,
    )

    partials = pl.pallas_call(
        kernel,
        out_shape=jax.ShapeDtypeStruct((1, 128 * nb), jnp.float32),
        grid_spec=pltpu.PrefetchScalarGridSpec(
            num_scalar_prefetch=0,
            grid=(nb, nd),
            in_specs=[
                pl.BlockSpec((TB, TD), lambda i, j: (i, j)),   # x1 (native dtype)
                pl.BlockSpec((TB, TD), lambda i, j: (i, j)),   # x2 (native dtype)
                pl.BlockSpec((TB, 1), lambda i, j: (i, 0)),    # target
            ],
            out_specs=pl.BlockSpec((1, 128), lambda i, j: (0, i)),  # per-batch-tile partial sums
            scratch_shapes=[pltpu.VMEM((TB, 1), jnp.float32)],      # per-row distance accumulator
        ),
        compiler_params=pltpu.CompilerParams(
            dimension_semantics=("parallel", "arbitrary"),
            vmem_limit_bytes=32 * 1024 * 1024,
        ),
    )(x_1, x_2, target_2d)

    total = jnp.sum(partials[0, ::128])
    if reduction == "mean":
        return total * (1.0 / jnp.float32(B))
    return total


def _reference(x_1, x_2, target, margin=1.0, p=2, reduction="mean"):
    x_1 = x_1.astype(jnp.float32)
    x_2 = x_2.astype(jnp.float32)
    diff = x_1 - x_2
    if p == 1:
        dist = jnp.sum(jnp.abs(diff), axis=1)
    else:
        dist = jnp.sqrt(jnp.sum(diff * diff, axis=1) + EPS)
    t = target.astype(jnp.float32)
    losses = 0.5 * (t * dist ** 2 + (1.0 - t) * jnp.maximum(margin - dist, 0.0) ** 2)
    return jnp.mean(losses) if reduction == "mean" else jnp.sum(losses)


if __name__ == "__main__":
    key = jax.random.PRNGKey(0)
    k1, k2, k3 = jax.random.split(key, 3)

    # Primary small case (single tile), f32, mean reduction, p=2.
    B, D = 8, 32
    x1 = jax.random.normal(k1, (B, D), dtype=jnp.float32)
    x2 = jax.random.normal(k2, (B, D), dtype=jnp.float32)
    tgt = jax.random.bernoulli(k3, 0.5, (B,)).astype(jnp.int32)

    loss = contrastive_loss(x1, x2, tgt, margin=1.0, p=2, reduction="mean")
    jax.block_until_ready(loss)
    ref = _reference(x1, x2, tgt)
    assert jnp.allclose(loss, ref, rtol=1e-5, atol=1e-6), (loss, ref)

    # Multi-tile case with padded tails on both axes, bf16 inputs, sum reduction.
    B2, D2 = 20, 288
    x1b = jax.random.normal(k1, (B2, D2), dtype=jnp.bfloat16)
    x2b = jax.random.normal(k2, (B2, D2), dtype=jnp.bfloat16)
    tgt2 = jax.random.bernoulli(k3, 0.5, (B2,)).astype(jnp.int32)
    loss2 = contrastive_loss(x1b, x2b, tgt2, reduction="sum", tb=8, td=128)
    jax.block_until_ready(loss2)
    ref2 = _reference(x1b, x2b, tgt2, reduction="sum")
    assert jnp.allclose(loss2, ref2, rtol=1e-4, atol=1e-4), (loss2, ref2)

    # p=1 (L1 distance) path.
    loss3 = contrastive_loss(x1, x2, tgt, p=1)
    jax.block_until_ready(loss3)
    ref3 = _reference(x1, x2, tgt, p=1)
    assert jnp.allclose(loss3, ref3, rtol=1e-5, atol=1e-6), (loss3, ref3)

    print("KERNEL_OK")
</pallas_src>

<mosaic_0001>
module attributes {stable_mosaic.version = 11 : i64} {
  func.func @_contrastive_loss_kernel(%arg0: i32, %arg1: i32, %arg2: memref<8x32xf32, #tpu.memory_space<vmem>>, %arg3: memref<8x32xf32, #tpu.memory_space<vmem>>, %arg4: memref<8x1xf32, #tpu.memory_space<vmem>>, %arg5: memref<1x128xf32, #tpu.memory_space<vmem>>, %arg6: memref<8x1xf32, #tpu.memory_space<vmem>>) attributes {dimension_semantics = [#tpu.dimension_semantics<parallel>, #tpu.dimension_semantics<arbitrary>], iteration_bounds = array<i64: 1, 1>, scalar_prefetch = 0 : i64, scratch_operands = 1 : i64, tpu.core_type = #tpu.core_type<tc>, window_params = [{transform_indices = @transform_0, window_bounds = array<i64: 8, 32>}, {transform_indices = @transform_1, window_bounds = array<i64: 8, 32>}, {transform_indices = @transform_2, window_bounds = array<i64: 8, 1>}, {transform_indices = @transform_3, window_bounds = array<i64: 1, 128>}]} {
    %c0 = arith.constant 0 : index
    %c0_0 = arith.constant 0 : index
    %0 = vector.load %arg2[%c0, %c0_0] : memref<8x32xf32, #tpu.memory_space<vmem>>, vector<8x32xf32>
    %c0_1 = arith.constant 0 : index
    %c0_2 = arith.constant 0 : index
    %1 = vector.load %arg3[%c0_1, %c0_2] : memref<8x32xf32, #tpu.memory_space<vmem>>, vector<8x32xf32>
    %2 = arith.subf %0, %1 : vector<8x32xf32>
    %3 = arith.mulf %2, %2 : vector<8x32xf32>
    %cst = arith.constant dense<0.000000e+00> : vector<8xf32>
    %4 = vector.multi_reduction <add>, %3, %cst [1] : vector<8x32xf32> to vector<8xf32>
    %5 = vector.shape_cast %4 : vector<8xf32> to vector<8x1xf32>
    %c0_i32 = arith.constant 0 : i32
    %6 = arith.cmpi eq, %arg1, %c0_i32 : i32
    %7 = arith.extui %6 : i1 to i32
    %c0_i32_3 = arith.constant 0 : i32
    %8 = arith.cmpi ne, %7, %c0_i32_3 : i32
    scf.if %8 {
      %cst_10 = arith.constant 0.000000e+00 : f32
      %15 = vector.broadcast %cst_10 : f32 to vector<8x1xf32>
      %c0_11 = arith.constant 0 : index
      %c0_12 = arith.constant 0 : index
      %16 = vector.load %arg6[%c0_11, %c0_12] : memref<8x1xf32, #tpu.memory_space<vmem>>, vector<8x1xf32>
      tpu.vector_store %arg6[%c0_11, %c0_12], %15 {strides = array<i32>} : memref<8x1xf32, #tpu.memory_space<vmem>>, vector<8x1xf32>,
    } else {
    }
    %c0_4 = arith.constant 0 : index
    %c0_5 = arith.constant 0 : index
    %9 = vector.load %arg6[%c0_4, %c0_5] : memref<8x1xf32, #tpu.memory_space<vmem>>, vector<8x1xf32>
    %10 = arith.addf %9, %5 : vector<8x1xf32>
    %c0_6 = arith.constant 0 : index
    %c0_7 = arith.constant 0 : index
    %11 = vector.load %arg6[%c0_6, %c0_7] : memref<8x1xf32, #tpu.memory_space<vmem>>, vector<8x1xf32>
    tpu.vector_store %arg6[%c0_6, %c0_7], %10 {strides = array<i32>} : memref<8x1xf32, #tpu.memory_space<vmem>>, vector<8x1xf32>,
    %c0_i32_8 = arith.constant 0 : i32
    %12 = arith.cmpi eq, %arg1, %c0_i32_8 : i32
    %13 = arith.extui %12 : i1 to i32
    %c0_i32_9 = arith.constant 0 : i32
    %14 = arith.cmpi ne, %13, %c0_i32_9 : i32
    scf.if %14 {
      %c0_10 = arith.constant 0 : index
      %c0_11 = arith.constant 0 : index
      %15 = vector.load %arg4[%c0_10, %c0_11] : memref<8x1xf32, #tpu.memory_space<vmem>>, vector<8x1xf32>
      %c0_12 = arith.constant 0 : index
      %c0_13 = arith.constant 0 : index
      %16 = vector.load %arg6[%c0_12, %c0_13] : memref<8x1xf32, #tpu.memory_space<vmem>>, vector<8x1xf32>
      %cst_14 = arith.constant 9.99999971E-10 : f32
      %17 = vector.broadcast %cst_14 : f32 to vector<8x1xf32>
      %18 = arith.addf %16, %17 : vector<8x1xf32>
      %19 = math.sqrt %18 : vector<8x1xf32>
      %cst_15 = arith.constant 1.000000e+00 : f32
      %20 = vector.broadcast %cst_15 : f32 to vector<8x1xf32>
      %21 = arith.subf %20, %19 : vector<8x1xf32>
      %cst_16 = arith.constant 0.000000e+00 : f32
      %22 = vector.broadcast %cst_16 : f32 to vector<8x1xf32>
      %23 = arith.maximumf %21, %22 : vector<8x1xf32>
      %24 = arith.mulf %15, %18 : vector<8x1xf32>
      %cst_17 = arith.constant 1.000000e+00 : f32
      %25 = vector.broadcast %cst_17 : f32 to vector<8x1xf32>
      %26 = arith.subf %25, %15 : vector<8x1xf32>
      %27 = arith.mulf %26, %23 : vector<8x1xf32>
      %28 = arith.mulf %27, %23 : vector<8x1xf32>
      %29 = arith.addf %24, %28 : vector<8x1xf32>
      %cst_18 = arith.constant 5.000000e-01 : f32
      %30 = vector.broadcast %cst_18 : f32 to vector<8x1xf32>
      %31 = arith.mulf %30, %29 : vector<8x1xf32>
      %32 = vector.shape_cast %31 : vector<8x1xf32> to vector<1x8x1xf32>
      %cst_19 = arith.constant dense<0.000000e+00> : vector<1xf32>
      %33 = vector.multi_reduction <add>, %32, %cst_19 [1, 2] : vector<1x8x1xf32> to vector<1xf32>
      %34 = vector.shape_cast %33 : vector<1xf32> to vector<1x1x1xf32>
      %35 = vector.extract %34[0, 0, 0] : f32 from vector<1x1x1xf32>
      %36 = vector.broadcast %35 : f32 to vector<1x128xf32>
      %c0_20 = arith.constant 0 : index
      %c0_21 = arith.constant 0 : index
      %37 = vector.load %arg5[%c0_20, %c0_21] : memref<1x128xf32, #tpu.memory_space<vmem>>, vector<1x128xf32>
      tpu.vector_store %arg5[%c0_20, %c0_21], %36 {strides = array<i32>} : memref<1x128xf32, #tpu.memory_space<vmem>>, vector<1x128xf32>,
    } else {
    }
    return
  }
  func.func @transform_0(%arg0: i32, %arg1: i32) -> (i32, i32) {
    %c0_i32 = arith.constant 0 : i32
    return %arg0, %arg1 : i32, i32
  }
  func.func @transform_1(%arg0: i32, %arg1: i32) -> (i32, i32) {
    %c0_i32 = arith.constant 0 : i32
    return %arg0, %arg1 : i32, i32
  }
  func.func @transform_2(%arg0: i32, %arg1: i32) -> (i32, i32) {
    %c0_i32 = arith.constant 0 : i32
    %c0_i32_0 = arith.constant 0 : i32
    return %arg0, %c0_i32 : i32, i32
  }
  func.func @transform_3(%arg0: i32, %arg1: i32) -> (i32, i32) {
    %c0_i32 = arith.constant 0 : i32
    %c0_i32_0 = arith.constant 0 : i32
    return %c0_i32, %arg0 : i32, i32
  }
}

</mosaic_0001>

<bundles_post_ra>
// kernel: tpu_custom_call.1
= control target key start
LH: loop header
LB: loop body
LE: loop exit
PB: predicated region body
PF: predicated region fallthrough
CT: control target
= control target key end

     0   :  { %8 = vsyncpa [#allocation4], 0  ;;  %s199_s0 = inlined_call_operand.vmem [shape: f32[8,32], index: 0, kind: input, shape index: {}]   ;;  %s200_s1 = inlined_call_operand.hbm [shape: f32[8,32], index: 1, kind: input, shape index: {}]   ;;  %s201_s2 = inlined_call_operand.vmem [shape: f32[8,1], index: 2, kind: input, shape index: {}]   ;;  %s202_s3 = inlined_call_operand.hbm [shape: f32[1,128], index: 3, kind: output, shape index: {}]  }
   0x1   :  { %9 = vsyncpa [#allocation5], 0  ;;  %s17_s14 = sshll.u32 %s200_s1, 4  ;;  %s161_s15 = smov [#allocation3]   ;;  %s18_s14 = int_to_ptr.hbm [resolvable:$true] %s17_s14 }
   0x2   :  { %s19_s16 = sshll.u32 %s161_s15, 4  ;;  %s20_s16 = int_to_ptr.vmem [resolvable:$true] %s19_s16 }
   0x3   :  { %22 = dma.hbm_to_vmem [thread:$0]  %s18_s14, 128, %s20_s16, [#allocation4]  }
   0x4   :  { %157 = dma.done.wait [#allocation4], 128  }
   0x5   :  { %158 = vsyncadd [#allocation4], 4294967168  ;;  %vm41_vm0 = vcmask 7168   ;;  %v162_v0 = vmov 0.0   ;;  %v29_v1 = vld [vmem:[%s199_s0] sm:$0xff]  ;;  %v30_v2 = vld [vmem:[#allocation3] sm:$0xff] }
   0x6   :  { %42 = vst.msk [vmem:[#allocation2] sm:$0xff] %vm41_vm0, %v162_v0  ;;  %v31_v3 = vsub.f32 %v29_v1, %v30_v2  ;;  %vm33_vm1 = vcmask 261120   ;;  %v50_v20 = vld [vmem:[%s201_s2] sm:$0xff]  ;;  %s163_s2 = smov [#allocation6]   ;;  %s92_s22 = sshll.u32 %s202_s3, 4  ;;  %s93_s22 = int_to_ptr.hbm [resolvable:$true] %s92_s22 }
   0x7   :  { %v68_v23 = vsub.f32 1.0, %v50_v20  ;;  %s90_s19 = sshll.u32 %s163_s2, 4  ;;  %s91_s19 = int_to_ptr.vmem [resolvable:$true] %s90_s19 }
   0x8   :  { %v32_v4 = vmul.f32 %v31_v3, %v31_v3 }
   0xa   :  { %v34_v5 = vsel %vm33_vm1, %v32_v4, 0.0 }
   0xb   :  { %35 = vadd.xlane.f32.xlu0 %v34_v5 }
   0xd   :  { %v43_v6 = vld [vmem:[#allocation2] sm:$0xff] }
  0x7e   :  { %v36_v7 = vpop.xlane.xlu0 %35 }
  0x7f   :  { %v44_v8 = vadd.f32 %v43_v6, %v36_v7 }
  0x81   :  { %46 = vst.msk [vmem:[#allocation2] sm:$0xff] %vm41_vm0, %v44_v8 }
  0x88   :  { %v51_v9 = vld [vmem:[#allocation2] sm:$0xff] }
  0x89   :  { %v52_v10 = vadd.f32 1e-09, %v51_v9 }
  0x8b   :  { %107 = vrsqrt.f32 %v52_v10  ;;  %vm60_vm2 = vcmp.eq.f32.partialorder %v52_v10, inf  ;;  %v63_v18 = vand.u32 2147483648, %v52_v10  ;;  %vm62_vm3 = vcmp.eq.f32.partialorder %v52_v10, 0.0 }
  0x8c   :  { %v67_v26 = vmul.f32 %v52_v10, %v50_v20 }
  0x91   :  { %v108_v11 = vpop.eup %107 }
  0x92   :  { %v54_v12 = vmul.f32 %v108_v11, %v52_v10 }
  0x94   :  { %v55_v13 = vmul.f32 %v108_v11, %v54_v12 }
  0x96   :  { %v56_v14 = vmul.f32 0.5, %v55_v13 }
  0x98   :  { %v57_v15 = vsub.f32 1.5, %v56_v14 }
  0x9a   :  { %v58_v16 = vmul.f32 %v108_v11, %v57_v15 }
  0x9c   :  { %v59_v17 = vmul.f32 %v58_v16, %v52_v10 }
  0x9e   :  { %v61_v19 = vsel %vm60_vm2, %v52_v10, %v59_v17 }
  0x9f   :  { %v64_v21 = vsel %vm62_vm3, %v63_v18, %v61_v19 }
  0xa0   :  { %v65_v22 = vsub.f32 1.0, %v64_v21 }
  0xa2   :  { %v66_v24 = vmax.f32 %v65_v22, 0.0 }
  0xa4   :  { %v69_v25 = vmul.f32 %v68_v23, %v66_v24 }
  0xa6   :  { %v70_v27 = vmul.f32 %v69_v25, %v66_v24 }
  0xa8   :  { %v71_v28 = vadd.f32 %v70_v27, %v67_v26 }
  0xaa   :  { %v72_v29 = vmul.f32 0.5, %v71_v28 }
  0xac   :  { %v73_v30 = vsel %vm41_vm0, %v72_v29, 0.0 }
  0xad   :  { %74 = vadd.xlane.f32.xlu0 %v73_v30 }
 0x120   :  { %v75_v31 = vpop.xlane.xlu0 %74 }
 0x121   :  { %v76_v32 = vrot.slane %v75_v31, 4 }
 0x123   :  { %v77_v33 = vadd.f32 %v76_v32, %v75_v31 }
 0x125   :  { %v78_v34 = vrot.slane %v77_v33, 2 }
 0x127   :  { %v79_v35 = vadd.f32 %v78_v34, %v77_v33 }
 0x129   :  { %v80_v36 = vrot.slane %v79_v35, 1 }
 0x12b   :  { %v81_v37 = vadd.f32 %v80_v36, %v79_v35 }
 0x12d   :  { %102 = vpush %v81_v37 }
 0x15e   :  { %s103_s23 = spop %102 }
 0x15f   :  { %v83_v38 = vstv %s103_s23 }
 0x160   :  { %84 = vst [vmem:[#allocation6] sm:$0x1] %v83_v38 }
 0x161   :  { %95 = dma.vmem_to_hbm [thread:$0]  %s91_s19, 16, %s93_s22, [#allocation5]  }
 0x162   :  { %159 = dma.done.wait [#allocation5], 16  }
 0x163   :  { %160 = vsyncadd [#allocation5], 4294967280 }
 0x164   :  { %100 = vsyncpa [#allocation4], 1 }
 0x165   :  { %101 = vsyncpa [#allocation5], 1 }

</bundles_post_ra>
